<compile_context>
chip_gen: v7x
topology: tpu7x:2x2x1
jax: 0.10.0
libtpu: 0.0.40
codegen_flags: <defaults>
</compile_context>

<pallas_src>
import functools
import math

import jax
import jax.numpy as jnp
from jax.experimental import pallas as pl
from jax.experimental.pallas import tpu as pltpu

_TWO_PI = 2.0 * math.pi


def _round_up(n: int, m: int) -> int:
    return ((n + m - 1) // m) * m


def _bf16_transcendentals_supported() -> bool:
    # bf16 EUP exists on v6e / v7x; keep f32 sin/cos on v5e and older.
    try:
        kind = jax.devices()[0].device_kind.lower()
    except Exception:
        return False
    return any(tag in kind for tag in ("v6", "v7", "7x"))


def _number_embedder_kernel(x_ref, wf_ref, wx_ref, wsin_ref, wcos_ref, b_ref,
                            o_ref, *, bf16_sincos: bool):
    # x_ref    : (TB, 1)       f32   batch tile of raw numbers
    # wf_ref   : (1, half)     f32   fourier weights (2*pi pre-folded)
    # wx_ref   : (1, F)        f32   linear column for the raw-x feature
    # wsin_ref : (half, F)     bf16  sin block of the linear weight
    # wcos_ref : (half, F)     bf16  cos block of the linear weight
    # b_ref    : (1, F)        f32   bias
    # o_ref    : (TB, F)       f32   lane-width == true feature count
    tb = x_ref.shape[0]
    half = wf_ref.shape[1]
    feat = wx_ref.shape[1]

    x = x_ref[...]                                        # (TB, 1)
    # Hoist the lane-broadcast of x once; reused below (no broadcast CSE in JAX).
    xb = jnp.broadcast_to(x, (tb, half))                  # (TB, half)
    freqs = xb * wf_ref[...]                              # 2*pi already folded in

    if bf16_sincos:
        # f32 range reduction to ~[-pi, pi]; only the transcendental itself is
        # lowered to bf16 (v6e/v7x EUP is bf16-capable -> ~2x EUP throughput).
        k = jnp.floor(freqs * (1.0 / _TWO_PI) + 0.5)
        r = freqs - k * _TWO_PI
        r16 = r.astype(jnp.bfloat16)
        s = jnp.sin(r16)                                  # (TB, half) bf16
        c = jnp.cos(r16)
    else:
        # v5e and older: no bf16 EUP -- keep sin/cos fully in f32.
        s = jnp.sin(freqs).astype(jnp.bfloat16)
        c = jnp.cos(freqs).astype(jnp.bfloat16)

    # Raw-x column + bias as a VPU broadcast multiply-add (no K=1 MXU pass).
    if feat <= half:
        xcol = xb[:, :feat]                               # reuse hoisted broadcast
    else:
        xcol = jnp.broadcast_to(x, (tb, feat))
    acc = xcol * wx_ref[...] + b_ref[...]                 # (TB, F) f32

    # Two K=half bf16 MXU passes with f32 accumulation (no f32 concat buffer).
    acc = acc + jnp.dot(s, wsin_ref[...], preferred_element_type=jnp.float32)
    acc = acc + jnp.dot(c, wcos_ref[...], preferred_element_type=jnp.float32)

    o_ref[...] = acc


class NumberEmbedderPallas:
    """JAX/Pallas re-implementation of the PyTorch NumberEmbedder module."""

    # Max rows per grid step.  Per-step VMEM at TB=2048, F=32, dim=256 is only
    # a few MiB (well under every generation's scoped limit, incl. v5e 16 MiB).
    _TB_MAX = 2048
    # Keep several grid steps when B allows: lets `parallel` shard across the
    # two v7x TensorCores and lets the out-DMA overlap compute.
    _MIN_GRID_STEPS = 4

    def __init__(self, features: int, dim: int = 256, key=None,
                 bf16_sincos: bool | None = None):
        assert dim % 2 == 0, f"dim must be divisible by 2, found {dim}"
        self.features = features
        self.dim = dim
        half = dim // 2

        if bf16_sincos is None:
            bf16_sincos = _bf16_transcendentals_supported()
        self.bf16_sincos = bool(bf16_sincos)

        if key is None:
            key = jax.random.PRNGKey(0)
        k_w, k_lin_w, k_lin_b = jax.random.split(key, 3)

        # nn.Parameter(torch.randn(dim // 2))
        w_fourier = jax.random.normal(k_w, (1, half), dtype=jnp.float32)
        self._ref_w_fourier = w_fourier                   # unscaled, for reference
        self.w_fourier = w_fourier * _TWO_PI              # fold 2*pi at init

        # nn.Linear(dim + 1, features): weight (features, dim+1), bias (features,)
        bound = 1.0 / math.sqrt(dim + 1)
        lin_w = jax.random.uniform(
            k_lin_w, (features, dim + 1), dtype=jnp.float32, minval=-bound, maxval=bound
        )
        lin_b = jax.random.uniform(
            k_lin_b, (features,), dtype=jnp.float32, minval=-bound, maxval=bound
        )

        # y = [x, sin, cos] @ W.T + b  -> split W.T into x-column / sin / cos.
        w_t = lin_w.T                                     # (dim+1, F)
        self.Wx = w_t[0:1, :]                             # (1, F)    f32 (VPU path)
        self.Wsin = w_t[1:1 + half, :].astype(jnp.bfloat16)      # (half, F) bf16
        self.Wcos = w_t[1 + half:, :].astype(jnp.bfloat16)       # (half, F) bf16
        self.bias = lin_b.reshape(1, features)            # (1, F)    f32

        # Keep f32 copies for the pure-JAX reference.
        self._ref_w_full = w_t
        self._ref_bias = lin_b.reshape(1, features)

    def __call__(self, x):
        x = jnp.asarray(x, dtype=jnp.float32)
        shape = x.shape
        xb = x.reshape(-1, 1)                             # '... -> (...)' then 'b -> b 1'
        B = xb.shape[0]

        half = self.dim // 2
        F = self.features

        # Tile policy: pad batch to a multiple of 8 sublanes, then pick the
        # largest TB <= _TB_MAX that still yields >= _MIN_GRID_STEPS steps.
        B8 = _round_up(max(B, 8), 8)
        tb = max(8, min(self._TB_MAX,
                        _round_up(pl.cdiv(B8, self._MIN_GRID_STEPS), 8)))
        B_pad = _round_up(B8, tb)
        if B_pad != B:
            xb = jnp.pad(xb, ((0, B_pad - B), (0, 0)))
        grid = (B_pad // tb,)

        cost = pl.CostEstimate(
            flops=2 * B_pad * self.dim * F + B_pad * (6 * half + 3 * F),
            transcendentals=2 * B_pad * half,
            bytes_accessed=(
                B_pad * 4                      # x in
                + B_pad * F * 4                # out (true width, no padding)
                + half * 4                     # fourier weights
                + 2 * half * F * 2             # Wsin + Wcos (bf16)
                + 2 * F * 4                    # x-column + bias
            ),
        )

        kernel = functools.partial(_number_embedder_kernel,
                                   bf16_sincos=self.bf16_sincos)

        out = pl.pallas_call(
            kernel,
            out_shape=jax.ShapeDtypeStruct((B_pad, F), jnp.float32),
            grid=grid,
            in_specs=[
                pl.BlockSpec((tb, 1), lambda i: (i, 0)),          # x tile
                pl.BlockSpec((1, half), lambda i: (0, 0)),        # fourier weights
                pl.BlockSpec((1, F), lambda i: (0, 0)),           # Wx
                pl.BlockSpec((half, F), lambda i: (0, 0)),        # Wsin (bf16)
                pl.BlockSpec((half, F), lambda i: (0, 0)),        # Wcos (bf16)
                pl.BlockSpec((1, F), lambda i: (0, 0)),           # bias
            ],
            # Last dim equals the full array dim -> legal block; true-width
            # f32 output keeps HBM writeback minimal.  If profiling ever shows
            # the out-DMA exposed, add pipeline_mode=pl.Buffered(3) here.
            out_specs=pl.BlockSpec((tb, F), lambda i: (i, 0)),
            compiler_params=pltpu.CompilerParams(
                dimension_semantics=("parallel",),
            ),
            cost_estimate=cost,
        )(xb, self.w_fourier, self.Wx, self.Wsin, self.Wcos, self.bias)

        out = out[:B]                                      # drop batch padding only
        return out.reshape(*shape, F)

    # pure-JAX f32 reference for correctness checking
    def reference(self, x):
        x = jnp.asarray(x, dtype=jnp.float32)
        shape = x.shape
        xb = x.reshape(-1, 1)
        freqs = xb * self._ref_w_fourier * _TWO_PI
        fouriered = jnp.concatenate([xb, jnp.sin(freqs), jnp.cos(freqs)], axis=-1)
        out = fouriered @ self._ref_w_full + self._ref_bias
        return out.reshape(*shape, self.features)


if __name__ == "__main__":
    key = jax.random.PRNGKey(0)
    k_param, k_x = jax.random.split(key)

    features = 32
    dim = 256
    module = NumberEmbedderPallas(features=features, dim=dim, key=k_param)

    # Input "numbers" of shape (2, 4, 16) -> output (2, 4, 16, features).
    x = jax.random.normal(k_x, (2, 4, 16), dtype=jnp.float32)

    out = module(x)
    out = jax.block_until_ready(out)

    ref = module.reference(x)
    assert out.shape == (2, 4, 16, features), out.shape
    # bf16 MXU weights (and bf16 sin/cos on v6e/v7x) vs an all-f32 reference.
    err = float(jnp.max(jnp.abs(out - ref)))
    assert err < 2.5e-2, err

    print("KERNEL_OK")
</pallas_src>

<mosaic_0001>
module attributes {stable_mosaic.version = 11 : i64} {
  func.func @_number_embedder_kernel(%arg0: i32, %arg1: memref<32x1xf32, #tpu.memory_space<vmem>>, %arg2: memref<1x128xf32, #tpu.memory_space<vmem>>, %arg3: memref<1x32xf32, #tpu.memory_space<vmem>>, %arg4: memref<128x32xbf16, #tpu.memory_space<vmem>>, %arg5: memref<128x32xbf16, #tpu.memory_space<vmem>>, %arg6: memref<1x32xf32, #tpu.memory_space<vmem>>, %arg7: memref<32x32xf32, #tpu.memory_space<vmem>>) attributes {dimension_semantics = [#tpu.dimension_semantics<parallel>], iteration_bounds = array<i64: 4>, scalar_prefetch = 0 : i64, scratch_operands = 0 : i64, tpu.core_type = #tpu.core_type<tc>, window_params = [{transform_indices = @transform_0, window_bounds = array<i64: 32, 1>}, {pipeline_mode = #tpu.pipeline_mode<synchronous>, transform_indices = @transform_1, window_bounds = array<i64: 1, 128>}, {pipeline_mode = #tpu.pipeline_mode<synchronous>, transform_indices = @transform_2, window_bounds = array<i64: 1, 32>}, {pipeline_mode = #tpu.pipeline_mode<synchronous>, transform_indices = @transform_3, window_bounds = array<i64: 128, 32>}, {pipeline_mode = #tpu.pipeline_mode<synchronous>, transform_indices = @transform_4, window_bounds = array<i64: 128, 32>}, {pipeline_mode = #tpu.pipeline_mode<synchronous>, transform_indices = @transform_5, window_bounds = array<i64: 1, 32>}, {transform_indices = @transform_6, window_bounds = array<i64: 32, 32>}]} {
    %c0 = arith.constant 0 : index
    %c0_0 = arith.constant 0 : index
    %0 = vector.load %arg1[%c0, %c0_0] : memref<32x1xf32, #tpu.memory_space<vmem>>, vector<32x1xf32>
    %1 = vector.shape_cast %0 : vector<32x1xf32> to vector<32x1xf32>
    %2 = vector.broadcast %1 : vector<32x1xf32> to vector<32x128xf32>
    %c0_1 = arith.constant 0 : index
    %c0_2 = arith.constant 0 : index
    %3 = vector.load %arg2[%c0_1, %c0_2] : memref<1x128xf32, #tpu.memory_space<vmem>>, vector<1x128xf32>
    %4 = vector.broadcast %3 : vector<1x128xf32> to vector<32x128xf32>
    %5 = arith.mulf %2, %4 : vector<32x128xf32>
    %6 = math.sin %5 : vector<32x128xf32>
    %7 = arith.truncf %6 : vector<32x128xf32> to vector<32x128xbf16>
    %8 = math.cos %5 : vector<32x128xf32>
    %9 = arith.truncf %8 : vector<32x128xf32> to vector<32x128xbf16>
    %10 = vector.extract_strided_slice %2 {offsets = [0, 0], sizes = [32, 32], strides = [1, 1]} : vector<32x128xf32> to vector<32x32xf32>
    %c0_3 = arith.constant 0 : index
    %c0_4 = arith.constant 0 : index
    %11 = vector.load %arg3[%c0_3, %c0_4] : memref<1x32xf32, #tpu.memory_space<vmem>>, vector<1x32xf32>
    %12 = vector.broadcast %11 : vector<1x32xf32> to vector<32x32xf32>
    %13 = arith.mulf %10, %12 : vector<32x32xf32>
    %c0_5 = arith.constant 0 : index
    %c0_6 = arith.constant 0 : index
    %14 = vector.load %arg6[%c0_5, %c0_6] : memref<1x32xf32, #tpu.memory_space<vmem>>, vector<1x32xf32>
    %15 = vector.broadcast %14 : vector<1x32xf32> to vector<32x32xf32>
    %16 = arith.addf %13, %15 : vector<32x32xf32>
    %c0_7 = arith.constant 0 : index
    %c0_8 = arith.constant 0 : index
    %17 = vector.load %arg4[%c0_7, %c0_8] : memref<128x32xbf16, #tpu.memory_space<vmem>>, vector<128x32xbf16>
    %cst = arith.constant dense<0.000000e+00> : vector<32x32xf32>
    %18 = tpu.matmul %7, %17, %cst {dimension_numbers = #tpu.dot_dimension_numbers<[1], [0], [0], [1], [0, 0, 1, 1], [], []>} : vector<32x128xbf16>, vector<128x32xbf16>, vector<32x32xf32> -> vector<32x32xf32>
    %19 = arith.addf %16, %18 : vector<32x32xf32>
    %c0_9 = arith.constant 0 : index
    %c0_10 = arith.constant 0 : index
    %20 = vector.load %arg5[%c0_9, %c0_10] : memref<128x32xbf16, #tpu.memory_space<vmem>>, vector<128x32xbf16>
    %cst_11 = arith.constant dense<0.000000e+00> : vector<32x32xf32>
    %21 = tpu.matmul %9, %20, %cst_11 {dimension_numbers = #tpu.dot_dimension_numbers<[1], [0], [0], [1], [0, 0, 1, 1], [], []>} : vector<32x128xbf16>, vector<128x32xbf16>, vector<32x32xf32> -> vector<32x32xf32>
    %22 = arith.addf %19, %21 : vector<32x32xf32>
    %c0_12 = arith.constant 0 : index
    %c0_13 = arith.constant 0 : index
    %23 = vector.load %arg7[%c0_12, %c0_13] : memref<32x32xf32, #tpu.memory_space<vmem>>, vector<32x32xf32>
    tpu.vector_store %arg7[%c0_12, %c0_13], %22 {strides = array<i32>} : memref<32x32xf32, #tpu.memory_space<vmem>>, vector<32x32xf32>,
    return
  }
  func.func @transform_0(%arg0: i32) -> (i32, i32) {
    %c0_i32 = arith.constant 0 : i32
    %c0_i32_0 = arith.constant 0 : i32
    return %arg0, %c0_i32 : i32, i32
  }
  func.func @transform_1(%arg0: i32) -> (i32, i32) {
    %c0_i32 = arith.constant 0 : i32
    %c0_i32_0 = arith.constant 0 : i32
    %c0_i32_1 = arith.constant 0 : i32
    return %c0_i32, %c0_i32_0 : i32, i32
  }
  func.func @transform_2(%arg0: i32) -> (i32, i32) {
    %c0_i32 = arith.constant 0 : i32
    %c0_i32_0 = arith.constant 0 : i32
    %c0_i32_1 = arith.constant 0 : i32
    return %c0_i32, %c0_i32_0 : i32, i32
  }
  func.func @transform_3(%arg0: i32) -> (i32, i32) {
    %c0_i32 = arith.constant 0 : i32
    %c0_i32_0 = arith.constant 0 : i32
    %c0_i32_1 = arith.constant 0 : i32
    return %c0_i32, %c0_i32_0 : i32, i32
  }
  func.func @transform_4(%arg0: i32) -> (i32, i32) {
    %c0_i32 = arith.constant 0 : i32
    %c0_i32_0 = arith.constant 0 : i32
    %c0_i32_1 = arith.constant 0 : i32
    return %c0_i32, %c0_i32_0 : i32, i32
  }
  func.func @transform_5(%arg0: i32) -> (i32, i32) {
    %c0_i32 = arith.constant 0 : i32
    %c0_i32_0 = arith.constant 0 : i32
    %c0_i32_1 = arith.constant 0 : i32
    return %c0_i32, %c0_i32_0 : i32, i32
  }
  func.func @transform_6(%arg0: i32) -> (i32, i32) {
    %c0_i32 = arith.constant 0 : i32
    %c0_i32_0 = arith.constant 0 : i32
    return %arg0, %c0_i32 : i32, i32
  }
}

</mosaic_0001>

<bundles_post_ra>
// kernel: tpu_custom_call.1
= control target key start
LH: loop header
LB: loop body
LE: loop exit
PB: predicated region body
PF: predicated region fallthrough
CT: control target
= control target key end

     0   :  { %s1685_s21 = smov 0   ;;  %s2137_s0 = inlined_call_operand.vmem [shape: f32[128,1], index: 0, kind: input, shape index: {}]   ;;  %s2138_s1 = inlined_call_operand.vmem [shape: f32[1,128], index: 1, kind: input, shape index: {}]   ;;  %s2139_s2 = inlined_call_operand.vmem [shape: f32[1,32], index: 2, kind: input, shape index: {}]   ;;  %s2140_s3 = inlined_call_operand.vmem [shape: bf16[128,32], index: 3, kind: input, shape index: {}]   ;;  %s2141_s4 = inlined_call_operand.vmem [shape: bf16[128,32], index: 4, kind: input, shape index: {}]   ;;  %s2142_s5 = inlined_call_operand.vmem [shape: f32[1,32], index: 5, kind: input, shape index: {}]   ;;  %s2143_s6 = inlined_call_operand.vmem [shape: f32[128,32], index: 6, kind: output, shape index: {}]  }
   0x1 LB: > { %s1440_s22 = sadd.s32 4294967295, %s1641_s21   ;;  %p1444_p0 = scmp.ge.s32.totalorder %s1641_s21, 1  ;;  %s1641_s21 = sphi %s1685_s21, %s16_s21  }
   0x2   : > { %p213_p1 = scmp.lt.s32.totalorder %s1641_s21, 5 }
   0x4   : > { %p214_p2 = pnand %p1444_p0, %p213_p1 }
   0x5   : > { %s1445_s23 = sshll.u32 (!%p214_p2), %s1440_s22, 2  ;;  %v1643_v0 = vmov (!%p214_p2), 0   ;;  %v1603_v5 = vld [vmem:[%s2140_s3] sm:$0xff] (!%p214_p2)   ;;  %v1605_v7 = vld [vmem:[%s2140_s3 + $0x8] sm:$0xff] (!%p214_p2)   ;;  %v1607_v9 = vld [vmem:[%s2140_s3 + $0x10] sm:$0xff] (!%p214_p2)  }
   0x6   : > { %217 = sbr.rel (%p214_p2) target bundleno = 491 (0x1eb), region = 44  ;;  %1602 = vset.pattern.permute.xlu1 (!%p214_p2), %v1643_v0  ;;  %1601 = vset.pattern.permute.xlu0 (!%p214_p2), %v1643_v0  ;;  %p244_p3 = scmp.lt.s32.totalorder (!%p214_p2), %s1445_s23, 15  ;;  %v1604_v6 = vld [vmem:[%s2141_s4] sm:$0xff] (!%p214_p2)   ;;  %v1606_v8 = vld [vmem:[%s2141_s4 + $0x8] sm:$0xff] (!%p214_p2)   ;;  %v1608_v10 = vld [vmem:[%s2141_s4 + $0x10] sm:$0xff] (!%p214_p2)  }
   0x7   : > { %1522 = vmatprep.subr.bf16.mxu1 (!%p214_p2), %v1603_v5  ;;  %1542 = vmatprep.subr.bf16.mxu0 (!%p214_p2), %v1604_v6  ;;  %v1609_v11 = vld [vmem:[%s2140_s3 + $0x18] sm:$0xff] (!%p214_p2)   ;;  %v1611_v13 = vld [vmem:[%s2140_s3 + $0x20] sm:$0xff] (!%p214_p2)   ;;  %v1613_v15 = vld [vmem:[%s2140_s3 + $0x28] sm:$0xff] (!%p214_p2)   ;;  %v1644_v54 = vmov (!%p214_p2), 683565275  }
   0x8   : > { %1523 = vmatpush3.bf16.msra.mxu1 (!%p214_p2), %v1603_v5  ;;  %1543 = vmatpush3.bf16.msra.mxu0 (!%p214_p2), %v1604_v6  ;;  %v1610_v12 = vld [vmem:[%s2141_s4 + $0x18] sm:$0xff] (!%p214_p2)   ;;  %v1612_v14 = vld [vmem:[%s2141_s4 + $0x20] sm:$0xff] (!%p214_p2)   ;;  %v1614_v16 = vld [vmem:[%s2141_s4 + $0x28] sm:$0xff] (!%p214_p2)   ;;  %v1645_v56 = vmov (!%p214_p2), 2475754826  }
   0x9   : > { %1524 = vmatprep.subr.bf16.mxu1 (!%p214_p2), %v1605_v7  ;;  %1544 = vmatprep.subr.bf16.mxu0 (!%p214_p2), %v1606_v8  ;;  %v1615_v17 = vld [vmem:[%s2140_s3 + $0x30] sm:$0xff] (!%p214_p2)   ;;  %v1617_v19 = vld [vmem:[%s2140_s3 + $0x38] sm:$0xff] (!%p214_p2)   ;;  %v1449_v21 = vld [vmem:[%s2138_s1] ss:$0 sm:$0xff] (!%p214_p2)  ;;  %v1646_v60 = vmov (!%p214_p2), 2131351028  }
   0xa   : > { %v1616_v18 = vld [vmem:[%s2141_s4 + $0x30] sm:$0xff] (!%p214_p2)   ;;  %v1618_v20 = vld [vmem:[%s2141_s4 + $0x38] sm:$0xff] (!%p214_p2)   ;;  %v1647_v63 = vmov (!%p214_p2), 2102212464   ;;  %v1649_v5 = vmov (!%p214_p2), 1326507024  }
   0xc   : > { %1525 = vmatpush3.bf16.msra.mxu1 (!%p214_p2), %v1605_v7  ;;  %1545 = vmatpush3.bf16.msra.mxu0 (!%p214_p2), %v1606_v8 }
   0xd   : > { %s2154_s23 = smov (!%p244_p3, %s1445_s23), 15  ;;  %1526 = vmatprep.subr.bf16.mxu1 %v1607_v9  ;;  %1546 = vmatprep.subr.bf16.mxu0 %v1608_v10 }
   0xe   : > { %s1446_s24 = sshll.u32 %s2154_s23, 3 }
   0xf   : > { %s247_s27 = scalar_lea.vmem %s2137_s0, %s1446_s24  ;;  %s253_s26 = scalar_lea.vmem %s2143_s6, %s1446_s24 }
  0x10   : > { %v258_v1 = vld [vmem:[%s247_s27 + $0x10] sm:$0xff]  ;;  %v256_v2 = vld [vmem:[%s247_s27] sm:$0xff]  ;;  %v259_v3 = vld [vmem:[%s247_s27 + $0x18] sm:$0xff]  ;;  %1527 = vmatpush3.bf16.msra.mxu1 %v1607_v9  ;;  %1547 = vmatpush3.bf16.msra.mxu0 %v1608_v10 }
  0x11   : > { %272 = vperm.xlu1 %1602, %v258_v1   ;;  %262 = vperm.xlu0 %1601, %v256_v2   ;;  %v257_v4 = vld [vmem:[%s247_s27 + $0x8] sm:$0xff]  ;;  %v1648_v2 = vmov 920167782  }
  0x12   : > { %1528 = vmatprep.subr.bf16.mxu1 %v1609_v11  ;;  %1548 = vmatprep.subr.bf16.mxu0 %v1610_v12 }
  0x14   : > { %1529 = vmatpush3.bf16.msra.mxu1 %v1609_v11  ;;  %1549 = vmatpush3.bf16.msra.mxu0 %v1610_v12 }
  0x15   : > { %277 = vperm.xlu1 %1602, %v259_v3   ;;  %267 = vperm.xlu0 %1601, %v257_v4  }
  0x16   : > { %1530 = vmatprep.subr.bf16.mxu1 %v1611_v13  ;;  %1550 = vmatprep.subr.bf16.mxu0 %v1612_v14 }
  0x18   : > { %1531 = vmatpush3.bf16.msra.mxu1 %v1611_v13  ;;  %1551 = vmatpush3.bf16.msra.mxu0 %v1612_v14 }
  0x19   : > { %1532 = vmatprep.subr.bf16.mxu1 %v1613_v15  ;;  %1552 = vmatprep.subr.bf16.mxu0 %v1614_v16 }
  0x1c   : > { %1533 = vmatpush3.bf16.msra.mxu1 %v1613_v15  ;;  %1553 = vmatpush3.bf16.msra.mxu0 %v1614_v16 }
  0x1d   : > { %1534 = vmatprep.subr.bf16.mxu1 %v1615_v17  ;;  %1554 = vmatprep.subr.bf16.mxu0 %v1616_v18 }
  0x20   : > { %1535 = vmatpush3.bf16.msra.mxu1 %v1615_v17  ;;  %1555 = vmatpush3.bf16.msra.mxu0 %v1616_v18 }
  0x21   : > { %1536 = vmatprep.subr.bf16.mxu1 %v1617_v19  ;;  %1556 = vmatprep.subr.bf16.mxu0 %v1618_v20 }
  0x24   : > { %1537 = vmatpush3.bf16.msra.mxu1 %v1617_v19  ;;  %1557 = vmatpush3.bf16.msra.mxu0 %v1618_v20 }
  0x90   : > { %v1752_v22 = vpop.permute.xlu1 %272  ;;  %v1754_v23 = vpop.permute.xlu0 %262 }
  0x91   : > { %v1757_v24 = vmul.f32 %v1449_v21, %v1752_v22  ;;  %v1760_v25 = vmul.f32 %v1449_v21, %v1754_v23 }
  0x93   : > { %v499_v26 = vand.u32 2147483647, %v1757_v24  ;;  %v502_v27 = vand.u32 2139095040, %v1757_v24  ;;  %v294_v28 = vand.u32 2139095040, %v1760_v25 }
  0x94   : > { %v1765_v29 = vpop.permute.xlu1 %277  ;;  %v1772_v36 = vpop.permute.xlu0 %267 }
  0x95   : > { %v503_v30 = vshrl.u32 %v502_v27, 23  ;;  %v295_v31 = vshrl.u32 %v294_v28, 23  ;;  %v506_v32 = vand.u32 8388607, %v499_v26  ;;  %v1770_v33 = vmul.f32 %v1449_v21, %v1765_v29 }
  0x96   : > { %v1776_v42 = vmul.f32 %v1449_v21, %v1772_v36 }
  0x97   : > { %v1458_v34 = vadd.s32 4294967169, %v503_v30  ;;  %v1450_v35 = vadd.s32 4294967169, %v295_v31  ;;  %v606_v37 = vand.u32 2139095040, %v1770_v33  ;;  %v507_v40 = vor.u32 8388608, %v506_v32 }
  0x98   : > { %v603_v43 = vand.u32 2147483647, %v1770_v33  ;;  %v395_v48 = vand.u32 2147483647, %v1776_v42  ;;  %v398_v52 = vand.u32 2139095040, %v1776_v42 }
  0x99   : > { %v509_v38 = vadd.s32 1, %v1458_v34  ;;  %v301_v39 = vadd.s32 1, %v1450_v35  ;;  %v607_v41 = vshrl.u32 %v606_v37, 23  ;;  %v1779_v47 = vshll.u32 %v507_v40, 8 }
  0x9a   : > { %v610_v51 = vand.u32 8388607, %v603_v43  ;;  %v399_v10 = vshrl.u32 %v398_v52, 23 }
  0x9b   : > { %vm510_vm0 = vcmp.gt.s32.totalorder %v509_v38, 0  ;;  %vm302_vm1 = vcmp.gt.s32.totalorder %v301_v39, 0  ;;  %v1462_v45 = vadd.s32 4294967169, %v607_v41 }
  0x9c   : > { %v511_v44 = vsel %vm510_vm0, %v509_v38, 0  ;;  %v1782_v50 = vsel %vm302_vm1, %v301_v39, 0  ;;  %v611_v32 = vor.u32 8388608, %v610_v51  ;;  %v1454_v40 = vadd.s32 4294967169, %v399_v10 }
  0x9d   : > { %v513_v46 = vand.u32 31, %v511_v44  ;;  %v512_v53 = vshrl.u32 %v511_v44, 5  ;;  %v613_v58 = vadd.s32 1, %v1462_v45  ;;  %v1799_v31 = vand.u32 31, %v1782_v50 }
  0x9e   : > { %v1812_v44 = vand.u32 8388607, %v395_v48  ;;  %v291_v45 = vand.u32 2147483647, %v1760_v25  ;;  %v1818_v52 = vshll.u32 %v611_v32, 8 }
  0x9f   : > { %v514_v49 = vsub.s32 32, %v513_v46  ;;  %v516_v55 = vshll.u32 %v1644_v54, %v513_v46  ;;  %v519_v57 = vshll.u32 %v1645_v56, %v513_v46  ;;  %v522_v62 = vshll.u32 %v1646_v60, %v513_v46 }
  0xa0   : > { %v525_v1 = vshll.u32 %v1647_v63, %v513_v46  ;;  %v528_v4 = vshll.u32 %v1648_v2, %v513_v46  ;;  %vm531_vm2 = vcmp.lt.s32.totalorder %v512_v53, 1  ;;  %vm534_vm3 = vcmp.lt.s32.totalorder %v512_v53, 4 }
  0xa1   : > { %v517_v59 = vshrl.u32 %v1645_v56, %v514_v49  ;;  %v520_v61 = vshrl.u32 %v1646_v60, %v514_v49  ;;  %v523_v0 = vshrl.u32 %v1647_v63, %v514_v49  ;;  %v526_v3 = vshrl.u32 %v1648_v2, %v514_v49 }
  0xa2   : > { %v529_v6 = vshrl.u32 %v1649_v5, %v514_v49  ;;  %v515_v13 = vshrl.u32 %v1644_v54, %v514_v49  ;;  %vm532_vm4 = vcmp.lt.s32.totalorder %v512_v53, 2  ;;  %vm533_vm5 = vcmp.lt.s32.totalorder %v512_v53, 3 }
  0xa3   : > { %v518_v7 = vor.u32 %v517_v59, %v516_v55  ;;  %v521_v8 = vor.u32 %v520_v61, %v519_v57  ;;  %v524_v9 = vor.u32 %v523_v0, %v522_v62  ;;  %v527_v11 = vor.u32 %v526_v3, %v525_v1 }
  0xa4   : > { %v530_v12 = vor.u32 %v529_v6, %v528_v4  ;;  %vm614_vm6 = vcmp.gt.s32.totalorder %v613_v58, 0  ;;  %v1816_v46 = vsub.s32 32, %v1799_v31  ;;  %v405_v57 = vadd.s32 1, %v1454_v40 }
  0xa5   : > { %v536_v14 = vsel %vm534_vm3, %v524_v9, 2102212464  ;;  %v539_v15 = vsel %vm531_vm2, %v518_v7, %v521_v8  ;;  %v543_v16 = vsel %vm531_vm2, %v521_v8, %v524_v9  ;;  %v540_v17 = vsel %vm534_vm3, %v527_v11, 920167782 }
  0xa6   : > { %v544_v18 = vsel %vm534_vm3, %v530_v12, 1326507024  ;;  %v535_v19 = vsel %vm531_vm2, %v515_v13, %v518_v7  ;;  %v537_v20 = vsel %vm533_vm5, %v521_v8, %v536_v14  ;;  %v541_v21 = vsel %vm533_vm5, %v524_v9, %v540_v17 }
  0xa7   : > { %v545_v27 = vsel %vm533_vm5, %v527_v11, %v544_v18  ;;  %v542_v28 = vsel %vm532_vm4, %v539_v15, %v541_v21  ;;  %v538_v39 = vsel %vm532_vm4, %v535_v19, %v537_v20  ;;  %v615_v41 = vsel %vm614_vm6, %v613_v58, 0 }
  0xa8   : > { %v546_v30 = vsel %vm532_vm4, %v543_v16, %v545_v27  ;;  %v1806_v37 = vmul.u32.u64.low %v1779_v47, %v542_v28  ;;  %v1807_v38 = vmul.u32.u64.high %v1779_v47, %v542_v28, %v1806_v37  ;;  %v616_v49 = vshrl.u32 %v615_v41, 5 }
  0xa9   : > { %v1802_v34 = vmul.u32.u64.low %v1779_v47, %v546_v30  ;;  %v1803_v35 = vmul.u32.u64.high %v1779_v47, %v546_v30, %v1802_v34  ;;  %v617_v51 = vand.u32 31, %v615_v41  ;;  %v554_v53 = vmul.u32 %v1779_v47, %v538_v39 }
  0xaa   : > { %v557_v55 = vadd.s32 1, %v1807_v38  ;;  %vm635_vm8 = vcmp.lt.s32.totalorder %v616_v49, 1  ;;  %vm636_vm9 = vcmp.lt.s32.totalorder %v616_v49, 2  ;;  %vm637_vm10 = vcmp.lt.s32.totalorder %v616_v49, 3 }
  0xab   : > { %vm556_vm7 = vc.u32 %v1803_v35, %v1806_v37  ;;  %v618_v58 = vsub.s32 32, %v617_v51  ;;  %v620_v59 = vshll.u32 %v1644_v54, %v617_v51  ;;  %v623_v61 = vshll.u32 %v1645_v56, %v617_v51 }
  0xac   : > { %v626_v62 = vshll.u32 %v1646_v60, %v617_v51  ;;  %v558_v0 = vsel %vm556_vm7, %v557_v55, %v1807_v38  ;;  %v629_v1 = vshll.u32 %v1647_v63, %v617_v51  ;;  %v632_v3 = vshll.u32 %v1648_v2, %v617_v51 }
  0xad   : > { %v559_v47 = vadd.s32 %v558_v0, %v554_v53  ;;  %v619_v4 = vshrl.u32 %v1644_v54, %v618_v58  ;;  %v621_v6 = vshrl.u32 %v1645_v56, %v618_v58  ;;  %v624_v7 = vshrl.u32 %v1646_v60, %v618_v58 }
  0xae   : > { %v627_v8 = vshrl.u32 %v1647_v63, %v618_v58  ;;  %v630_v9 = vshrl.u32 %v1648_v2, %v618_v58  ;;  %v633_v10 = vshrl.u32 %v1649_v5, %v618_v58  ;;  %vm638_vm11 = vcmp.lt.s32.totalorder %v616_v49, 4 }
  0xaf   : > { %v560_v11 = vadd.s32 536870912, %v559_v47  ;;  %v622_v12 = vor.u32 %v621_v6, %v620_v59  ;;  %v625_v13 = vor.u32 %v624_v7, %v623_v61  ;;  %vm406_vm12 = vcmp.gt.s32.totalorder %v405_v57, 0 }
  0xb0   : > { %v628_v14 = vor.u32 %v627_v8, %v626_v62  ;;  %v631_v15 = vor.u32 %v630_v9, %v629_v1  ;;  %v634_v16 = vor.u32 %v633_v10, %v632_v3  ;;  %v318_v39 = vshrl.u32 %v1648_v2, %v1816_v46 }
  0xb1   : > { %v1836_v17 = vshrl.u32 %v560_v11, 30  ;;  %v639_v18 = vsel %vm635_vm8, %v619_v4, %v622_v12  ;;  %v643_v19 = vsel %vm635_vm8, %v622_v12, %v625_v13  ;;  %v407_v51 = vsel %vm406_vm12, %v405_v57, 0 }
  0xb2   : > { %v640_v20 = vsel %vm638_vm11, %v628_v14, 2102212464  ;;  %v644_v21 = vsel %vm638_vm11, %v631_v15, 920167782  ;;  %v647_v27 = vsel %vm635_vm8, %v625_v13, %v628_v14  ;;  %v648_v28 = vsel %vm638_vm11, %v634_v16, 1326507024 }
  0xb3   : > { %v562_v30 = vshll.u32 %v1836_v17, 30  ;;  %v641_v32 = vsel %vm637_vm10, %v625_v13, %v640_v20  ;;  %v645_v34 = vsel %vm637_vm10, %v628_v14, %v644_v21  ;;  %v649_v38 = vsel %vm637_vm10, %v631_v15, %v648_v28 }
  0xb4   : > { %v646_v40 = vsel %vm636_vm9, %v643_v19, %v645_v34  ;;  %v650_v41 = vsel %vm636_vm9, %v647_v27, %v649_v38  ;;  %v642_v55 = vsel %vm636_vm9, %v639_v18, %v641_v32  ;;  %v317_v61 = vshll.u32 %v1647_v63, %v1799_v31 }
  0xb5   : > { %v1849_v53 = vsub.s32 %v559_v47, %v562_v30  ;;  %v1853_v58 = vmul.u32.u64.low %v1818_v52, %v650_v41  ;;  %v1854_v59 = vmul.u32.u64.high %v1818_v52, %v650_v41, %v1853_v58  ;;  %v409_v1 = vand.u32 31, %v407_v51 }
  0xb6   : > { %v1859_v62 = vmul.u32.u64.low %v1818_v52, %v646_v40  ;;  %v1860_v0 = vmul.u32.u64.high %v1818_v52, %v646_v40, %v1859_v62  ;;  %v1865_v57 = vshrl.u32 %v1782_v50, 5  ;;  %v1869_v49 = vshll.u32 %v1648_v2, %v1799_v31 }
  0xb7   : > { %v565_v3 = vsub.s32 0, %v1849_v53  ;;  %v1873_v47 = vshrl.u32 %v1649_v5, %v1816_v46  ;;  %v1875_v4 = vor.u32 %v318_v39, %v317_v61  ;;  %v658_v6 = vmul.u32 %v1818_v52, %v642_v55 }
  0xb8   : > { %v408_v7 = vshrl.u32 %v407_v51, 5  ;;  %v410_v8 = vsub.s32 32, %v409_v1  ;;  %vm660_vm13 = vc.u32 %v1854_v59, %v1859_v62  ;;  %v412_v50 = vshll.u32 %v1644_v54, %v409_v1 }
  0xb9   : > { %v1459_v9 = vmin.u32 %v565_v3, %v1849_v53  ;;  %v415_v10 = vshll.u32 %v1645_v56, %v409_v1  ;;  %v661_v11 = vadd.s32 1, %v1860_v0  ;;  %v418_v14 = vshll.u32 %v1646_v60, %v409_v1 }
  0xba   : > { %v413_v12 = vshrl.u32 %v1645_v56, %v410_v8  ;;  %v416_v13 = vshrl.u32 %v1646_v60, %v410_v8  ;;  %v419_v15 = vshrl.u32 %v1647_v63, %v410_v8  ;;  %v421_v16 = vshll.u32 %v1647_v63, %v409_v1 }
  0xbb   : > { %v567_v52 = vclz %v1459_v9  ;;  %v422_v18 = vshrl.u32 %v1648_v2, %v410_v8  ;;  %v662_v19 = vsel %vm660_vm13, %v661_v11, %v1860_v0  ;;  %v424_v21 = vshll.u32 %v1648_v2, %v409_v1 }
  0xbc   : > { %v414_v20 = vor.u32 %v413_v12, %v412_v50  ;;  %v425_v27 = vshrl.u32 %v1649_v5, %v410_v8  ;;  %v663_v30 = vadd.s32 %v662_v19, %v658_v6  ;;  %v417_v32 = vor.u32 %v416_v13, %v415_v10 }
  0xbd   : > { %v1460_v28 = vadd.s32 4294967294, %v567_v52  ;;  %v423_v34 = vor.u32 %v422_v18, %v421_v16  ;;  %v403_v38 = vor.u32 8388608, %v1812_v44  ;;  %v420_v39 = vor.u32 %v419_v15, %v418_v14 }
  0xbe   : > { %v426_v40 = vor.u32 %v425_v27, %v424_v21  ;;  %v1896_v41 = vand.u32 8388607, %v291_v45  ;;  %v322_v51 = vor.u32 %v1873_v47, %v1869_v49  ;;  %vm326_vm14 = vcmp.lt.s32.totalorder %v1865_v57, 4 }
  0xbf   : > { %v664_v2 = vadd.s32 536870912, %v663_v30  ;;  %vm430_vm15 = vcmp.lt.s32.totalorder %v408_v7, 4  ;;  %v332_v5 = vsel %vm326_vm14, %v1875_v4, 920167782  ;;  %v411_v55 = vshrl.u32 %v1644_v54, %v410_v8 }
  0xc0   : > { %vm427_vm0 = vcmp.lt.s32.totalorder %v408_v7, 1  ;;  %v436_v44 = vsel %vm430_vm15, %v423_v34, 920167782  ;;  %vm1461_vm1 = vcmp.lt.s32.totalorder %v1460_v28, 0  ;;  %vm429_vm2 = vcmp.lt.s32.totalorder %v408_v7, 3 }
  0xc1   : > { %v1905_v58 = vshrl.u32 %v664_v2, 30  ;;  %v435_v61 = vsel %vm427_vm0, %v414_v20, %v417_v32  ;;  %v432_v0 = vsel %vm430_vm15, %v420_v39, 2102212464  ;;  %v437_v1 = vsel %vm429_vm2, %v420_v39, %v436_v44 }
  0xc2   : > { %v439_v3 = vsel %vm427_vm0, %v417_v32, %v420_v39  ;;  %v440_v49 = vsel %vm430_vm15, %v426_v40, 1326507024  ;;  %vm428_vm3 = vcmp.lt.s32.totalorder %v408_v7, 2  ;;  %v443_v6 = vshll.u32 %v403_v38, 8 }
  0xc3   : > { %v666_v47 = vshll.u32 %v1905_v58, 30  ;;  %v308_v9 = vshll.u32 %v1644_v54, %v1799_v31  ;;  %v431_v8 = vsel %vm427_vm0, %v411_v55, %v414_v20  ;;  %v438_v50 = vsel %vm428_vm3, %v435_v61, %v437_v1 }
  0xc4   : > { %v441_v10 = vsel %vm429_vm2, %v423_v34, %v440_v49  ;;  %v309_v11 = vshrl.u32 %v1645_v56, %v1816_v46  ;;  %v1916_v12 = vsel %vm1461_vm1, 0, %v1460_v28  ;;  %v433_v14 = vsel %vm429_vm2, %v417_v32, %v432_v0 }
  0xc5   : > { %v1918_v13 = vsub.s32 %v663_v30, %v666_v47  ;;  %v442_v52 = vsel %vm428_vm3, %v439_v3, %v441_v10  ;;  %v1925_v18 = vmul.u32.u64.low %v443_v6, %v438_v50  ;;  %v1926_v19 = vmul.u32.u64.high %v443_v6, %v438_v50, %v1925_v18 }
  0xc6   : > { %v1922_v15 = vmul.u32.u64.low %v443_v6, %v442_v52  ;;  %v1923_v16 = vmul.u32.u64.high %v443_v6, %v442_v52, %v1922_v15  ;;  %v299_v21 = vor.u32 8388608, %v1896_v41  ;;  %v311_v27 = vshll.u32 %v1645_v56, %v1799_v31 }
  0xc7   : > { %v669_v20 = vsub.s32 0, %v1918_v13  ;;  %v312_v28 = vshrl.u32 %v1646_v60, %v1816_v46  ;;  %v434_v30 = vsel %vm428_vm3, %v431_v8, %v433_v14  ;;  %v310_v32 = vor.u32 %v309_v11, %v308_v9 }
  0xc8   : > { %v314_v34 = vshll.u32 %v1646_v60, %v1799_v31  ;;  %v315_v38 = vshrl.u32 %v1647_v63, %v1816_v46  ;;  %v575_v39 = vsub.s32 4294967266, %v1916_v12  ;;  %v336_v40 = vsel %vm326_vm14, %v322_v51, 1326507024 }
  0xc9   : > { %v1463_v41 = vmin.u32 %v669_v20, %v1918_v13  ;;  %v313_v56 = vor.u32 %v312_v28, %v311_v27  ;;  %vm452_vm4 = vc.u32 %v1923_v16, %v1925_v18  ;;  %v453_v7 = vadd.s32 1, %v1926_v19 }
  0xca   : > { %v307_v2 = vshrl.u32 %v1644_v54, %v1816_v46  ;;  %v316_v60 = vor.u32 %v315_v38, %v314_v34  ;;  %v450_v55 = vmul.u32 %v443_v6, %v434_v30  ;;  %vm323_vm5 = vcmp.lt.s32.totalorder %v1865_v57, 1 }
  0xcb   : > { %v671_v31 = vclz %v1463_v41  ;;  %vm325_vm6 = vcmp.lt.s32.totalorder %v1865_v57, 3  ;;  %v454_v63 = vsel %vm452_vm4, %v453_v7, %v1926_v19  ;;  %v331_v51 = vsel %vm323_vm5, %v310_v32, %v313_v56 }
  0xcc   : > { %v333_v44 = vsel %vm325_vm6, %v316_v60, %v332_v5  ;;  %v335_v61 = vsel %vm323_vm5, %v313_v56, %v316_v60  ;;  %v571_v54 = vsub.s32 32, %v1916_v12  ;;  %v576_v46 = vadd.s32 127, %v575_v39 }
  0xcd   : > { %v1464_v0 = vadd.s32 4294967294, %v671_v31  ;;  %v455_v1 = vadd.s32 %v454_v63, %v450_v55  ;;  %vm324_vm7 = vcmp.lt.s32.totalorder %v1865_v57, 2  ;;  %v328_v3 = vsel %vm326_vm14, %v316_v60, 2102212464 }
  0xce   : > { %v337_v49 = vsel %vm325_vm6, %v1875_v4, %v336_v40  ;;  %v339_v47 = vshll.u32 %v299_v21, 8  ;;  %v334_v6 = vsel %vm324_vm7, %v331_v51, %v333_v44  ;;  %v555_v8 = vadd.s32 %v1806_v37, %v1803_v35 }
  0xcf   : > { %vm1465_vm8 = vcmp.lt.s32.totalorder %v1464_v0, 0  ;;  %v456_v5 = vadd.s32 536870912, %v455_v1  ;;  %v338_v9 = vsel %vm324_vm7, %v335_v61, %v337_v49  ;;  %v577_v14 = vshll.u32 %v576_v46, 23 }
  0xd0   : > { %v674_v50 = vsel %vm1465_vm8, 0, %v1464_v0  ;;  %v1971_v10 = vmul.u32.u64.low %v339_v47, %v338_v9  ;;  %v1972_v11 = vmul.u32.u64.high %v339_v47, %v338_v9, %v1971_v10  ;;  %v327_v4 = vsel %vm323_vm5, %v307_v2, %v310_v32 }
  0xd1   : > { %v679_v52 = vsub.s32 4294967266, %v674_v50  ;;  %v329_v15 = vsel %vm325_vm6, %v313_v56, %v328_v3  ;;  %v1978_v19 = vshrl.u32 %v456_v5, 30  ;;  %v573_v27 = vshrl.u32 %v555_v8, %v571_v54 }
  0xd2   : > { %v1980_v20 = vmul.u32.u64.low %v339_v47, %v334_v6  ;;  %v1981_v21 = vmul.u32.u64.high %v339_v47, %v334_v6, %v1980_v20  ;;  %v330_v28 = vsel %vm324_vm7, %v327_v4, %v329_v15  ;;  %v572_v30 = vshll.u32 %v1849_v53, %v1916_v12 }
  0xd3   : > { %v680_v35 = vadd.s32 127, %v679_v52  ;;  %v458_v37 = vshll.u32 %v1978_v19, 30  ;;  %v578_v32 = vor.u32 4788187, %v577_v14  ;;  %v675_v34 = vsub.s32 32, %v674_v50 }
  0xd4   : > { %vm348_vm9 = vc.u32 %v1972_v11, %v1980_v20  ;;  %v349_v39 = vadd.s32 1, %v1981_v21  ;;  %v574_v40 = vor.u32 %v573_v27, %v572_v30  ;;  %v659_v41 = vadd.s32 %v1859_v62, %v1854_v59 }
  0xd5   : > { %v459_v38 = vsub.s32 %v455_v1, %v458_v37  ;;  %v681_v56 = vshll.u32 %v680_v35, 23  ;;  %v346_v7 = vmul.u32 %v339_v47, %v330_v28  ;;  %v579_v60 = vand.u32 2147483647, %v578_v32 }
  0xd6   : > { %v350_v57 = vsel %vm348_vm9, %v349_v39, %v1981_v21  ;;  %v677_v31 = vshrl.u32 %v659_v41, %v675_v34  ;;  %v581_v55 = vcvt.s32.f32 %v574_v40  ;;  %v676_v63 = vshll.u32 %v1918_v13, %v674_v50 }
  0xd7   : > { %v461_v2 = vsub.s32 0, %v459_v38  ;;  %v351_v53 = vadd.s32 %v350_v57, %v346_v7  ;;  %v682_v51 = vor.u32 4788187, %v681_v56  ;;  %v451_v6 = vadd.s32 %v1925_v18, %v1923_v16 }
  0xd8   : > { %v582_v54 = vmul.f32 %v581_v55, %v579_v60  ;;  %v678_v46 = vor.u32 %v677_v31, %v676_v63  ;;  %vm501_vm11 = vcmp.lt.s32.totalorder %v1757_v24, 0  ;;  %vm2006_vm12 = vcmp.le.f32.partialorder %v499_v26, 0.7853982 }
  0xd9   : > { %v1455_v12 = vmin.u32 %v461_v2, %v459_v38  ;;  %v352_v44 = vadd.s32 536870912, %v351_v53  ;;  %v683_v62 = vand.u32 2147483647, %v682_v51  ;;  %v585_v32 = vsub.s32 4, %v1836_v17 }
  0xda   : > { %v583_v3 = vxor.u32 2147483648, %v582_v54  ;;  %v685_v49 = vcvt.s32.f32 %v678_v46  ;;  %vm605_vm13 = vcmp.lt.s32.totalorder %v1770_v33, 0  ;;  %vm2017_vm14 = vcmp.le.f32.partialorder %v603_v43, 0.7853982 }
  0xdb   : > { %v463_v61 = vclz %v1455_v12  ;;  %v1996_v0 = vshrl.u32 %v352_v44, 30  ;;  %v481_v56 = vsub.s32 4, %v1978_v19  ;;  %v347_v7 = vadd.s32 %v1980_v20, %v1972_v11 }
  0xdc   : > { %v686_v8 = vmul.f32 %v685_v49, %v683_v62  ;;  %v584_v4 = vsel %vm501_vm11, %v583_v3, %v582_v54  ;;  %v586_v43 = vsel %vm501_vm11, %v585_v32, %v1836_v17  ;;  %vm397_vm0 = vcmp.lt.s32.totalorder %v1776_v42, 0 }
  0xdd   : > { %v1456_v59 = vadd.s32 4294967294, %v463_v61  ;;  %v354_v1 = vshll.u32 %v1996_v0, 30  ;;  %v587_v37 = vsel %vm2006_vm12, %v1757_v24, %v584_v4  ;;  %vm396_vm1 = vcmp.le.f32.partialorder %v395_v48, 0.7853982 }
  0xde   : > { %v687_v16 = vxor.u32 2147483648, %v686_v8  ;;  %1619 = vcosq.f32 %v587_v37  ;;  %v482_v20 = vsel %vm397_vm0, %v481_v56, %v1978_v19  ;;  %v588_v63 = vsel %vm2006_vm12, 0, %v586_v43 }
  0xdf   : > { %vm1457_vm10 = vcmp.lt.s32.totalorder %v1456_v59, 0  ;;  %v355_v5 = vsub.s32 %v351_v53, %v354_v1  ;;  %1621 = vsinq.f32 %v587_v37  ;;  %v689_v17 = vsub.s32 4, %v1905_v58 }
  0xe0   : > { %v466_v47 = vsel %vm1457_vm10, 0, %v1456_v59  ;;  %v688_v39 = vsel %vm605_vm13, %v687_v16, %v686_v8  ;;  %v377_v46 = vsub.s32 4, %v1996_v0  ;;  %v484_v59 = vsel %vm396_vm1, 0, %v482_v20 }
  0xe1   : > { %v467_v13 = vsub.s32 32, %v466_v47  ;;  %v471_v9 = vsub.s32 4294967266, %v466_v47  ;;  %v357_v50 = vsub.s32 0, %v355_v5  ;;  %v468_v10 = vshll.u32 %v459_v38, %v466_v47 }
  0xe2   : > { %v691_v60 = vsel %vm2017_vm14, %v1770_v33, %v688_v39  ;;  %v592_v48 = vadd.s32 3, %v588_v63  ;;  %v690_v3 = vsel %vm605_vm13, %v689_v17, %v1905_v58  ;;  %vm293_vm2 = vcmp.lt.s32.totalorder %v1760_v25, 0 }
  0xe3   : > { %v469_v14 = vshrl.u32 %v451_v6, %v467_v13  ;;  %v472_v52 = vadd.s32 127, %v471_v9  ;;  %v1451_v15 = vmin.u32 %v357_v50, %v355_v5  ;;  %1623 = vcosq.f32 %v691_v60 }
  0xe4   : > { %1625 = vsinq.f32 %v691_v60  ;;  %v378_v6 = vsel %vm293_vm2, %v377_v46, %v1996_v0  ;;  %v2050_v13 = vand.u32 3, %v484_v59  ;;  %v593_v9 = vand.u32 3, %v592_v48 }
  0xe5   : > { %v470_v21 = vor.u32 %v469_v14, %v468_v10  ;;  %v473_v27 = vshll.u32 %v472_v52, 23  ;;  %v359_v18 = vclz %v1451_v15  ;;  %v692_v8 = vsel %vm2017_vm14, 0, %v690_v3 }
  0xe6   : > { %vm292_vm3 = vcmp.le.f32.partialorder %v291_v45, 0.7853982  ;;  %v696_v0 = vadd.s32 3, %v692_v8  ;;  %vm907_vm4 = vcmp.eq.s32.totalorder %v2050_v13, 0  ;;  %vm595_vm5 = vcmp.eq.s32.totalorder %v593_v9, 0 }
  0xe7   : > { %v474_v28 = vor.u32 4788187, %v473_v27  ;;  %v1452_v30 = vadd.s32 4294967294, %v359_v18  ;;  %v477_v38 = vcvt.s32.f32 %v470_v21  ;;  %v380_v4 = vsel %vm292_vm3, 0, %v378_v6 }
  0xe8   : > { %v2041_v62 = vpop.eup %1619  ;;  %vm598_vm6 = vcmp.eq.s32.totalorder %v593_v9, 2  ;;  %v384_v37 = vadd.s32 3, %v380_v4  ;;  %v697_v32 = vand.u32 3, %v696_v0  ;;  %vm594_vm12 = vcmp.lt.s32.totalorder %v593_v9, 2 }
  0xe9   : > { %v475_v34 = vand.u32 2147483647, %v474_v28  ;;  %vm1453_vm15 = vcmp.lt.s32.totalorder %v1452_v30, 0  ;;  %v2046_v49 = vpop.eup %1621  ;;  %v599_v14 = vxor.u32 2147483648, %v2041_v62  ;;  %v2065_v28 = vand.u32 3, %v380_v4 }
  0xea   : > { %v362_v41 = vsel %vm1453_vm15, 0, %v1452_v30  ;;  %v596_v10 = vxor.u32 2147483648, %v2046_v49  ;;  %v1008_v30 = vand.u32 3, %v588_v63  ;;  %vm695_vm13 = vweird.f32 %v1770_v33 }
  0xeb   : > { %v478_v40 = vmul.f32 %v477_v38, %v475_v34  ;;  %v363_v2 = vsub.s32 32, %v362_v41  ;;  %v367_v57 = vsub.s32 4294967266, %v362_v41  ;;  %v364_v53 = vshll.u32 %v355_v5, %v362_v41 }
  0xec   : > { %v488_v5 = vadd.s32 3, %v484_v59  ;;  %v597_v16 = vsel %vm595_vm5, %v2041_v62, %v596_v10  ;;  %v600_v45 = vsel %vm598_vm6, %v599_v14, %v2046_v49  ;;  %v1111_v34 = vand.u32 3, %v692_v8 }
  0xed   : > { %v479_v31 = vxor.u32 2147483648, %v478_v40  ;;  %v365_v12 = vshrl.u32 %v347_v7, %v363_v2  ;;  %v368_v55 = vadd.s32 127, %v367_v57  ;;  %v1624_v58 = vpop.eup %1623  ;;  %v601_v41 = vsel %vm594_vm12, %v597_v16, %v600_v45 }
  0xee   : > { %v2058_v15 = vand.u32 3, %v488_v5  ;;  %v1626_v21 = vpop.eup %1625  ;;  %v703_v26 = vxor.u32 2147483648, %v1624_v58  ;;  %v385_v56 = vand.u32 3, %v384_v37  ;;  %vm487_vm14 = vweird.f32 %v1776_v42 }
  0xef   : > { %v480_v11 = vsel %vm397_vm0, %v479_v31, %v478_v40  ;;  %v366_v51 = vor.u32 %v365_v12, %v364_v53  ;;  %v369_v44 = vshll.u32 %v368_v55, 23  ;;  %v700_v38 = vxor.u32 2147483648, %v1626_v21 }
  0xf0   : > { %v483_v61 = vsel %vm396_vm1, %v1776_v42, %v480_v11  ;;  %vm491_vm9 = vcmp.eq.s32.totalorder %v2058_v15, 0  ;;  %vm494_vm11 = vcmp.eq.s32.totalorder %v2058_v15, 2  ;;  %vm804_vm15 = vcmp.eq.s32.totalorder %v2065_v28, 0 }
  0xf1   : > { %v370_v54 = vor.u32 4788187, %v369_v44  ;;  %1627 = vcosq.f32 %v483_v61  ;;  %v373_v1 = vcvt.s32.f32 %v366_v51  ;;  %vm1010_vm0 = vcmp.eq.s32.totalorder %v1008_v30, 0 }
  0xf2   : > { %1629 = vsinq.f32 %v483_v61  ;;  %vm1013_vm1 = vcmp.eq.s32.totalorder %v1008_v30, 2  ;;  %vm699_vm5 = vcmp.eq.s32.totalorder %v697_v32, 0  ;;  %vm702_vm6 = vcmp.eq.s32.totalorder %v697_v32, 2 }
  0xf3   : > { %v371_v19 = vand.u32 2147483647, %v370_v54  ;;  %vm1113_vm10 = vcmp.eq.s32.totalorder %v1111_v34, 0  ;;  %vm1116_vm8 = vcmp.eq.s32.totalorder %v1111_v34, 2  ;;  %vm383_vm7 = vweird.f32 %v1760_v25 }
  0xf4   : > { %v701_v7 = vsel %vm699_vm5, %v1624_v58, %v700_v38  ;;  %v704_v2 = vsel %vm702_vm6, %v703_v26, %v1626_v21  ;;  %v1115_v57 = vsel %vm1113_vm10, %v1624_v58, %v700_v38  ;;  %v1118_v43 = vsel %vm1116_vm8, %v703_v26, %v1626_v21 }
  0xf5   : > { %v374_v47 = vmul.f32 %v373_v1, %v371_v19  ;;  %vm2148_vm12 = vcmp.eq.s32.totalorder %v2050_v13, 2  ;;  %v1012_v55 = vsel %vm1010_vm0, %v2041_v62, %v596_v10  ;;  %v1015_v11 = vsel %vm1013_vm1, %v599_v14, %v2046_v49 }
  0xf6   : > { %vm1112_vm8 = vcmp.lt.s32.totalorder %v1111_v34, 2  ;;  %vm386_vm10 = vcmp.lt.s32.totalorder %v385_v56, 2  ;;  %vm1009_vm5 = vcmp.lt.s32.totalorder %v1008_v30, 2  ;;  %vm387_vm0 = vcmp.eq.s32.totalorder %v385_v56, 0 }
  0xf7   : > { %v375_v50 = vxor.u32 2147483648, %v374_v47  ;;  %v1119_v17 = vsel %vm1112_vm8, %v1115_v57, %v1118_v43  ;;  %vm390_vm6 = vcmp.eq.s32.totalorder %v385_v56, 2  ;;  %v1016_v59 = vsel %vm1009_vm5, %v1012_v55, %v1015_v11 }
  0xf8   : > { %v1120_v1 = vsel %vm695_vm13, nan, %v1119_v17  ;;  %vm2151_vm1 = vweird.f32 %v1757_v24  ;;  %v1482_v24 = vld [vmem:[%s2139_s2] ss:$0 sm:$0xff] }
  0xf9   : > { %v376_v52 = vsel %vm293_vm2, %v375_v50, %v374_v47  ;;  %vm803_vm2 = vcmp.lt.s32.totalorder %v2065_v28, 2  ;;  %v602_v9 = vsel %vm2151_vm1, nan, %v601_v41  ;;  %v1130_v4 = vmul.f32 %v1482_v24, %v1754_v23 }
  0xfa   : > { %v379_v27 = vsel %vm292_vm3, %v1760_v25, %v376_v52  ;;  %vm698_vm3 = vcmp.lt.s32.totalorder %v697_v32, 2  ;;  %v1132_v52 = vmul.f32 %v1482_v24, %v1752_v22  ;;  %v1483_v25 = vld [vmem:[%s2142_s5] ss:$0 sm:$0xff]  ;;  %v1131_v0 = vmul.f32 %v1482_v24, %v1772_v36 }
  0xfb   : > { %v1628_v35 = vpop.eup %1627  ;;  %1631 = vcosq.f32 %v379_v27  ;;  %v705_v63 = vsel %vm698_vm3, %v701_v7, %v704_v2  ;;  %v1141_v16 = vadd.f32 %v1483_v25, %v1130_v4 }
  0xfc   : > { %v1630_v18 = vpop.eup %1629  ;;  %1633 = vsinq.f32 %v379_v27  ;;  %v495_v40 = vxor.u32 2147483648, %v1628_v35  ;;  %v706_v19 = vsel %vm695_vm13, nan, %v705_v63  ;;  %vm2152_vm13 = vmmov %vm2151_vm1  ;;  %v1143_v21 = vadd.f32 %v1483_v25, %v1132_v52 }
  0xfd   : > { %v492_v39 = vxor.u32 2147483648, %v1630_v18  ;;  %v1017_v33 = vsel %vm2152_vm13, nan, %v1016_v59  ;;  %v708_v10 = vpack.c.bf16 %v706_v19, %v602_v9 }
  0xfe   : > { %v496_v31 = vsel %vm494_vm11, %v495_v40, %v1630_v18  ;;  %v912_v12 = vsel %vm2148_vm12, %v495_v40, %v1630_v18  ;;  %vm2150_vm11 = vcmp.lt.s32.totalorder %v2050_v13, 2  ;;  %v1122_v42 = vpack.c.bf16 %v1120_v1, %v1017_v33 }
  0xff   : > { %v493_v60 = vsel %vm491_vm9, %v1628_v35, %v492_v39  ;;  %v909_v53 = vsel %vm907_vm4, %v1628_v35, %v492_v39  ;;  %vm807_vm9 = vcmp.eq.s32.totalorder %v2065_v28, 2  ;;  %vm2149_vm4 = vcmp.lt.s32.totalorder %v2058_v15, 2 }
 0x100   : > { %v497_v61 = vsel %vm2149_vm4, %v493_v60, %v496_v31  ;;  %v913_v54 = vsel %vm2150_vm11, %v909_v53, %v912_v12  ;;  %v1133_v15 = vmul.f32 %v1482_v24, %v1765_v29  ;;  %v1142_v29 = vadd.f32 %v1483_v25, %v1131_v0 }
 0x101   : > { %v498_v49 = vsel %vm487_vm14, nan, %v497_v61  ;;  %v914_v5 = vsel %vm487_vm14, nan, %v913_v54 }
 0x102   : > { %v1144_v28 = vadd.f32 %v1483_v25, %v1133_v15 }
 0x105   : > { %v1632_v20 = vpop.eup %1631 }
 0x106   : > { %v1634_v51 = vpop.eup %1633  ;;  %v391_v44 = vxor.u32 2147483648, %v1632_v20 }
 0x107   : > { %v388_v46 = vxor.u32 2147483648, %v1634_v51 }
 0x108   : > { %v392_v48 = vsel %vm390_vm6, %v391_v44, %v1634_v51  ;;  %v809_v62 = vsel %vm807_vm9, %v391_v44, %v1634_v51 }
 0x109   : > { %v389_v3 = vsel %vm387_vm0, %v1632_v20, %v388_v46  ;;  %v806_v47 = vsel %vm804_vm15, %v1632_v20, %v388_v46 }
 0x10a   : > { %v393_v6 = vsel %vm386_vm10, %v389_v3, %v392_v48  ;;  %v810_v13 = vsel %vm803_vm2, %v806_v47, %v809_v62 }
 0x10b   : > { %v394_v8 = vsel %vm383_vm7, nan, %v393_v6  ;;  %v811_v50 = vsel %vm383_vm7, nan, %v810_v13  ;;  %vm1379_vm7 = vcmask 261120  }
 0x10c   : > { %v707_v14 = vpack.c.bf16 %v498_v49, %v394_v8  ;;  %v1121_v58 = vpack.c.bf16 %v914_v5, %v811_v50 }
 0x10e   : > { %1538 = vmatprep.mubr.bf16.mxu1 %v707_v14  ;;  %1558 = vmatprep.mubr.bf16.mxu0 %v1121_v58 }
 0x10f   : > { %1539 = vmatmul.mubr.bf16.vlgmr.msra.gmra.mrb[0].mxu1 %v708_v10  ;;  %1559 = vmatmul.mubr.bf16.vlgmr.msra.gmra.mrb[0].mxu0 %v1122_v42 }
 0x1e2   : > { %v1540_v27 = vpop.f32.mrb[0].mxu1  ;;  %v1560_v35 = vpop.f32.mrb[0].mxu0 }
 0x1e3   : > { %v1260_v45 = vadd.f32 %v1540_v27, %v1143_v21  ;;  %v1243_v18 = vpop.f32.mrb[1].mxu1  ;;  %v1360_v37 = vpop.f32.mrb[1].mxu0 }
 0x1e4   : > { %v1258_v22 = vadd.f32 %v1243_v18, %v1141_v16  ;;  %v1541_v23 = vpop.f32.mrb[2].mxu1  ;;  %v1561_v30 = vpop.f32.mrb[2].mxu0 }
 0x1e5   : > { %v1377_v32 = vadd.f32 %v1560_v35, %v1260_v45  ;;  %v1261_v36 = vadd.f32 %v1541_v23, %v1144_v28  ;;  %v1246_v34 = vpop.f32.mrb[3].mxu1  ;;  %v1363_v38 = vpop.f32.mrb[3].mxu0 }
 0x1e6   : > { %v1375_v26 = vadd.f32 %v1360_v37, %v1258_v22  ;;  %v1259_v39 = vadd.f32 %v1246_v34, %v1142_v29 }
 0x1e7   : > { %1382 = vst.msk [vmem:[%s253_s26 + $0x10] sm:$0xff] %vm1379_vm7, %v1377_v32  ;;  %v1378_v40 = vadd.f32 %v1561_v30, %v1261_v36 }
 0x1e8   : > { %1380 = vst.msk [vmem:[%s253_s26] sm:$0xff] %vm1379_vm7, %v1375_v26  ;;  %v1376_v41 = vadd.f32 %v1363_v38, %v1259_v39 }
 0x1e9   : > { %1383 = vst.msk [vmem:[%s253_s26 + $0x18] sm:$0xff] %vm1379_vm7, %v1378_v40 }
 0x1ea   : > { %1381 = vst.msk [vmem:[%s253_s26 + $0x8] sm:$0xff] %vm1379_vm7, %v1376_v41 }
 0x1eb PF: > { %s16_s21 = sadd.s32 1, %s1641_s21  }
 0x1ec   : > { %p13_p4 = scmp.ge.s32.totalorder %s16_s21, 6  }
 0x1ee   :  { %15 = sbr.rel (!%p13_p4) target bundleno = 1 (0x1), region = 74 }

</bundles_post_ra>
